<compile_context>
chip_gen: v5e
topology: v5e:2x2
jax: 0.10.0
libtpu: 0.0.40
codegen_flags: <defaults>
</compile_context>

<pallas_src>
import functools

import jax
import jax.numpy as jnp
from jax.experimental import pallas as pl
from jax.experimental.pallas import tpu as pltpu


def _round_up(a: int, b: int) -> int:
    return ((a + b - 1) // b) * b


# ---------------------------------------------------------------------------
# Kernel bodies
# ---------------------------------------------------------------------------
def _mlp_tile(x, w1, b1, w2, b2, out_dtype, compute_dtype):
    """One (C_in, TN) token tile through fc1 -> ReLU6 -> fc2.

    Tokens live on the 128-lane (minor) axis; the contraction is over the
    channel (sublane) axis, so every lane is independent -- garbage lanes from
    edge blocks never contaminate valid lanes.
    """
    x = x.astype(compute_dtype)                                   # in-kernel cast
    h = jnp.dot(w1, x, preferred_element_type=jnp.float32)        # (C_hid, TN), f32 acc
    h = h + b1                                                    # f32 bias, lane broadcast
    h = jnp.clip(h, 0.0, 6.0)                                     # ReLU6
    # Dropout(p=0.2): eval-mode identity.
    h = h.astype(compute_dtype)
    o = jnp.dot(w2, h, preferred_element_type=jnp.float32)        # (C_out, TN), f32 acc
    o = o + b2
    # Dropout(p=0.2): eval-mode identity.
    return o.astype(out_dtype)


def _mlp_kernel_squeezed(x_ref, w1_ref, b1_ref, w2_ref, b2_ref, o_ref, *,
                         compute_dtype):
    # Batch dim squeezed away: x_ref (C_in, TN), o_ref (C_out, TN).
    o_ref[...] = _mlp_tile(x_ref[...], w1_ref[...], b1_ref[...],
                           w2_ref[...], b2_ref[...], o_ref.dtype, compute_dtype)


def _mlp_kernel_batched(x_ref, w1_ref, b1_ref, w2_ref, b2_ref, o_ref, *,
                        nb, compute_dtype):
    # Several images per grid step: x_ref (NB, C_in, TN), o_ref (NB, C_out, TN).
    w1 = w1_ref[...]
    b1 = b1_ref[...]
    w2 = w2_ref[...]
    b2 = b2_ref[...]
    for i in range(nb):  # static unroll; images are independent
        o_ref[i] = _mlp_tile(x_ref[i], w1, b1, w2, b2, o_ref.dtype, compute_dtype)


# ---------------------------------------------------------------------------
# Tiling / VMEM budgeting
# ---------------------------------------------------------------------------
def _vmem_step_bytes(nb, tn, c_in, c_hid, c_out, x_bytes, o_bytes, w_bytes):
    """Rough per-grid-step VMEM working set."""
    io = 2 * nb * tn * (c_in * x_bytes + c_out * o_bytes)          # double-buffered x / o tiles
    wts = (c_hid * c_in + c_out * c_hid) * w_bytes + (c_hid + c_out) * 4  # single-buffered
    inter = nb * tn * (c_hid * 4 + c_hid * w_bytes + c_out * 4)    # f32 h, bf16 h, f32 o
    return io + wts + inter


def _choose_tiles(n, hw, c_in, c_hid, c_out, x_bytes, o_bytes, w_bytes,
                  tn_max, vmem_budget):
    """Pick (batch_block nb, token tile tn).  tn is a multiple of 128."""
    hw128 = _round_up(hw, 128)
    tn = min(_round_up(tn_max, 128), hw128)
    while tn > 128 and _vmem_step_bytes(1, tn, c_in, c_hid, c_out,
                                        x_bytes, o_bytes, w_bytes) > vmem_budget:
        tn = _round_up(tn // 2, 128)

    nb = 1
    if tn >= hw128 and n > 2:
        # One token tile already covers a whole image: fold several images
        # into each grid step to amortize the ~0.35us/step overhead, but keep
        # >= 2 batch steps so both v7x TensorCores get work.
        nb = max(1, min(n // 2, max(1, _round_up(tn_max, 128) // hw128)))
        while nb > 1 and _vmem_step_bytes(nb, tn, c_in, c_hid, c_out,
                                          x_bytes, o_bytes, w_bytes) > vmem_budget:
            nb = (nb + 1) // 2
    return nb, tn


# ---------------------------------------------------------------------------
# Public wrapper
# ---------------------------------------------------------------------------
def mlp_forward(x_nchw, w1, b1, w2, b2, *, tn=8192,
                compute_dtype=jnp.bfloat16,
                vmem_budget_bytes=20 * 1024 * 1024):
    """Forward pass of the conv-MLP (eval mode).

    x_nchw: (N, C_in, H, W)
    w1:     (C_hid, C_in)   -- PyTorch fc1.weight[:, :, 0, 0]
    b1:     (C_hid,)
    w2:     (C_out, C_hid)  -- PyTorch fc2.weight[:, :, 0, 0]
    b2:     (C_out,)
    Returns (N, C_out, H, W) in x_nchw.dtype.
    """
    N, C_in, H, W = x_nchw.shape
    C_hid, _c_in = w1.shape
    C_out, _c_hid = w2.shape
    assert _c_in == C_in and _c_hid == C_hid

    HW = H * W
    out_dtype = x_nchw.dtype

    # NCHW -> (N, C_in, H*W): contiguous (free) reshape; tokens land on lanes.
    # No padding and no dtype cast here -- x is read exactly once from HBM by
    # the kernel, and ragged tails are handled by Pallas edge-block masking.
    x_tok = x_nchw.reshape(N, C_in, HW)

    # Weights are tiny relative to activations: cast once outside so the DMA
    # moves bf16; biases stay f32 as (C, 1) lane-broadcast columns.
    w1_c = w1.astype(compute_dtype)
    w2_c = w2.astype(compute_dtype)
    b1_2d = b1.reshape(C_hid, 1).astype(jnp.float32)
    b2_2d = b2.reshape(C_out, 1).astype(jnp.float32)

    x_bytes = x_tok.dtype.itemsize
    o_bytes = jnp.dtype(out_dtype).itemsize
    w_bytes = jnp.dtype(compute_dtype).itemsize

    nb, tn_eff = _choose_tiles(N, HW, C_in, C_hid, C_out,
                               x_bytes, o_bytes, w_bytes, tn, vmem_budget_bytes)

    grid = (pl.cdiv(N, nb), pl.cdiv(HW, tn_eff))

    # Weights / biases: constant index map -> never re-DMA'd, so a single
    # buffer is enough (saves VMEM for larger token tiles).
    wconst = dict(pipeline_mode=pl.Buffered(1))
    w_specs = [
        pl.BlockSpec((C_hid, C_in), lambda n, t: (0, 0), **wconst),
        pl.BlockSpec((C_hid, 1), lambda n, t: (0, 0), **wconst),
        pl.BlockSpec((C_out, C_hid), lambda n, t: (0, 0), **wconst),
        pl.BlockSpec((C_out, 1), lambda n, t: (0, 0), **wconst),
    ]

    if nb == 1:
        kernel = functools.partial(_mlp_kernel_squeezed,
                                   compute_dtype=compute_dtype)
        x_spec = pl.BlockSpec((pl.Squeezed(), C_in, tn_eff), lambda n, t: (n, 0, t))
        o_spec = pl.BlockSpec((pl.Squeezed(), C_out, tn_eff), lambda n, t: (n, 0, t))
    else:
        kernel = functools.partial(_mlp_kernel_batched,
                                   nb=nb, compute_dtype=compute_dtype)
        x_spec = pl.BlockSpec((nb, C_in, tn_eff), lambda n, t: (n, 0, t))
        o_spec = pl.BlockSpec((nb, C_out, tn_eff), lambda n, t: (n, 0, t))

    flops = 2 * N * HW * (C_hid * C_in + C_out * C_hid)
    bytes_accessed = (x_tok.size * x_bytes
                      + N * C_out * HW * o_bytes
                      + (w1_c.size + w2_c.size) * w_bytes
                      + (b1_2d.size + b2_2d.size) * 4)

    step_bytes = _vmem_step_bytes(nb, tn_eff, C_in, C_hid, C_out,
                                  x_bytes, o_bytes, w_bytes)
    # 32..64 MiB is safe on every generation (v7x physical VMEM is 64 MiB);
    # raise vmem_budget_bytes on v6e (128 MiB) for even larger tiles.
    vmem_limit = int(max(32 * 1024 * 1024,
                         min(2 * step_bytes, 64 * 1024 * 1024)))

    out_tok = pl.pallas_call(
        kernel,
        out_shape=jax.ShapeDtypeStruct((N, C_out, HW), out_dtype),
        grid_spec=pltpu.PrefetchScalarGridSpec(
            num_scalar_prefetch=0,
            grid=grid,
            in_specs=[x_spec] + w_specs,
            out_specs=o_spec,
        ),
        compiler_params=pltpu.CompilerParams(
            # Both grid axes are independent -> shardable across v7x's 2 TCs.
            dimension_semantics=("parallel", "parallel"),
            vmem_limit_bytes=vmem_limit,
        ),
        cost_estimate=pl.CostEstimate(
            flops=flops, transcendentals=0, bytes_accessed=bytes_accessed),
    )(x_tok, w1_c, b1_2d, w2_c, b2_2d)

    # Free reshape back to NCHW.
    return out_tok.reshape(N, C_out, H, W)


def mlp_reference(x_nchw, w1, b1, w2, b2, *, compute_dtype=jnp.bfloat16):
    """Pure-JAX reference with the same operand roundings as the kernel."""
    N, C_in, H, W = x_nchw.shape
    C_out = w2.shape[0]
    x = x_nchw.reshape(N, C_in, H * W).astype(compute_dtype)
    h = jnp.einsum("hc,nct->nht", w1.astype(compute_dtype), x,
                   preferred_element_type=jnp.float32)
    h = h + b1.astype(jnp.float32)[None, :, None]
    h = jnp.clip(h, 0.0, 6.0).astype(compute_dtype)
    o = jnp.einsum("oh,nht->not", w2.astype(compute_dtype), h,
                   preferred_element_type=jnp.float32)
    o = o + b2.astype(jnp.float32)[None, :, None]
    return o.reshape(N, C_out, H, W).astype(x_nchw.dtype)


if __name__ == "__main__":
    # Module config: in_features=4, hidden_features=32, out_features=4
    N, C_in, H, W = 2, 4, 16, 16
    C_hid, C_out = 32, 4

    key = jax.random.PRNGKey(0)
    kx, k1, kb1, k2, kb2 = jax.random.split(key, 5)

    x = jax.random.normal(kx, (N, C_in, H, W), dtype=jnp.float32)
    # PyTorch Conv2d 1x1 weights are (out, in, 1, 1); stored here squeezed as
    # (out, in) matrices (same math).
    w1 = jax.random.normal(k1, (C_hid, C_in), dtype=jnp.float32) * 0.1
    b1 = jax.random.normal(kb1, (C_hid,), dtype=jnp.float32) * 0.1
    w2 = jax.random.normal(k2, (C_out, C_hid), dtype=jnp.float32) * 0.1
    b2 = jax.random.normal(kb2, (C_out,), dtype=jnp.float32) * 0.1

    out = jax.block_until_ready(mlp_forward(x, w1, b1, w2, b2))
    ref = mlp_reference(x, w1, b1, w2, b2)
    assert out.shape == (N, C_out, H, W)
    assert jnp.allclose(out, ref, atol=2e-3, rtol=2e-3), \
        float(jnp.max(jnp.abs(out - ref)))

    # Ragged spatial size (H*W=63, not a multiple of 128): exercises the
    # masked edge block on the token (lane) axis -- no explicit padding.
    x2 = jax.random.normal(kx, (3, C_in, 7, 9), dtype=jnp.float32)
    out2 = jax.block_until_ready(mlp_forward(x2, w1, b1, w2, b2))
    ref2 = mlp_reference(x2, w1, b1, w2, b2)
    assert out2.shape == (3, C_out, 7, 9)
    assert jnp.allclose(out2, ref2, atol=2e-3, rtol=2e-3), \
        float(jnp.max(jnp.abs(out2 - ref2)))

    # Many small images: exercises batch folding (several images per grid
    # step) plus a partial batch edge block (7 is not a multiple of 3).
    x3 = jax.random.normal(kx, (7, C_in, 8, 8), dtype=jnp.float32)
    out3 = jax.block_until_ready(mlp_forward(x3, w1, b1, w2, b2))
    ref3 = mlp_reference(x3, w1, b1, w2, b2)
    assert out3.shape == (7, C_out, 8, 8)
    assert jnp.allclose(out3, ref3, atol=2e-3, rtol=2e-3), \
        float(jnp.max(jnp.abs(out3 - ref3)))

    print("KERNEL_OK")
</pallas_src>

<mosaic_0001>
module attributes {stable_mosaic.version = 11 : i64} {
  func.func @_mlp_kernel_squeezed(%arg0: i32, %arg1: i32, %arg2: memref<1x4x256xf32, #tpu.memory_space<vmem>>, %arg3: memref<32x4xbf16, #tpu.memory_space<vmem>>, %arg4: memref<32x1xf32, #tpu.memory_space<vmem>>, %arg5: memref<4x32xbf16, #tpu.memory_space<vmem>>, %arg6: memref<4x1xf32, #tpu.memory_space<vmem>>, %arg7: memref<1x4x256xf32, #tpu.memory_space<vmem>>) attributes {dimension_semantics = [#tpu.dimension_semantics<parallel>, #tpu.dimension_semantics<parallel>], iteration_bounds = array<i64: 2, 1>, scalar_prefetch = 0 : i64, scratch_operands = 0 : i64, tpu.core_type = #tpu.core_type<tc>, window_params = [{transform_indices = @transform_0, window_bounds = array<i64: 1, 4, 256>}, {pipeline_mode = #tpu.pipeline_mode<synchronous>, transform_indices = @transform_1, window_bounds = array<i64: 32, 4>}, {pipeline_mode = #tpu.pipeline_mode<synchronous>, transform_indices = @transform_2, window_bounds = array<i64: 32, 1>}, {pipeline_mode = #tpu.pipeline_mode<synchronous>, transform_indices = @transform_3, window_bounds = array<i64: 4, 32>}, {pipeline_mode = #tpu.pipeline_mode<synchronous>, transform_indices = @transform_4, window_bounds = array<i64: 4, 1>}, {transform_indices = @transform_5, window_bounds = array<i64: 1, 4, 256>}]} {
    %c0 = arith.constant 0 : index
    %c0_0 = arith.constant 0 : index
    %c0_1 = arith.constant 0 : index
    %0 = vector.load %arg2[%c0, %c0_0, %c0_1] : memref<1x4x256xf32, #tpu.memory_space<vmem>>, vector<1x4x256xf32>
    %1 = vector.shape_cast %0 : vector<1x4x256xf32> to vector<4x256xf32>
    %c0_2 = arith.constant 0 : index
    %c0_3 = arith.constant 0 : index
    %2 = vector.load %arg3[%c0_2, %c0_3] : memref<32x4xbf16, #tpu.memory_space<vmem>>, vector<32x4xbf16>
    %c0_4 = arith.constant 0 : index
    %c0_5 = arith.constant 0 : index
    %3 = vector.load %arg4[%c0_4, %c0_5] : memref<32x1xf32, #tpu.memory_space<vmem>>, vector<32x1xf32>
    %c0_6 = arith.constant 0 : index
    %c0_7 = arith.constant 0 : index
    %4 = vector.load %arg5[%c0_6, %c0_7] : memref<4x32xbf16, #tpu.memory_space<vmem>>, vector<4x32xbf16>
    %c0_8 = arith.constant 0 : index
    %c0_9 = arith.constant 0 : index
    %5 = vector.load %arg6[%c0_8, %c0_9] : memref<4x1xf32, #tpu.memory_space<vmem>>, vector<4x1xf32>
    %6 = arith.truncf %1 : vector<4x256xf32> to vector<4x256xbf16>
    %cst = arith.constant dense<0.000000e+00> : vector<32x256xf32>
    %7 = tpu.matmul %2, %6, %cst {dimension_numbers = #tpu.dot_dimension_numbers<[1], [0], [0], [1], [0, 0, 1, 1], [], []>} : vector<32x4xbf16>, vector<4x256xbf16>, vector<32x256xf32> -> vector<32x256xf32>
    %8 = vector.broadcast %3 : vector<32x1xf32> to vector<32x256xf32>
    %9 = arith.addf %7, %8 : vector<32x256xf32>
    %cst_10 = arith.constant 0.000000e+00 : f32
    %cst_11 = arith.constant 6.000000e+00 : f32
    %10 = vector.broadcast %cst_10 : f32 to vector<32x256xf32>
    %11 = arith.maximumf %10, %9 : vector<32x256xf32>
    %12 = vector.broadcast %cst_11 : f32 to vector<32x256xf32>
    %13 = arith.minimumf %12, %11 : vector<32x256xf32>
    %14 = arith.truncf %13 : vector<32x256xf32> to vector<32x256xbf16>
    %cst_12 = arith.constant dense<0.000000e+00> : vector<4x256xf32>
    %15 = tpu.matmul %4, %14, %cst_12 {dimension_numbers = #tpu.dot_dimension_numbers<[1], [0], [0], [1], [0, 0, 1, 1], [], []>} : vector<4x32xbf16>, vector<32x256xbf16>, vector<4x256xf32> -> vector<4x256xf32>
    %16 = vector.broadcast %5 : vector<4x1xf32> to vector<4x256xf32>
    %17 = arith.addf %15, %16 : vector<4x256xf32>
    %c0_13 = arith.constant 0 : index
    %c0_14 = arith.constant 0 : index
    %c0_15 = arith.constant 0 : index
    %18 = vector.load %arg7[%c0_13, %c0_14, %c0_15] : memref<1x4x256xf32, #tpu.memory_space<vmem>>, vector<1x4x256xf32>
    %19 = vector.shape_cast %18 : vector<1x4x256xf32> to vector<4x256xf32>
    %20 = vector.shape_cast %17 : vector<4x256xf32> to vector<1x4x256xf32>
    tpu.vector_store %arg7[%c0_13, %c0_14, %c0_15], %20 {strides = array<i32>} : memref<1x4x256xf32, #tpu.memory_space<vmem>>, vector<1x4x256xf32>,
    return
  }
  func.func @transform_0(%arg0: i32, %arg1: i32) -> (i32, i32, i32) {
    %c0_i32 = arith.constant 0 : i32
    %c0_i32_0 = arith.constant 0 : i32
    return %arg0, %c0_i32, %arg1 : i32, i32, i32
  }
  func.func @transform_1(%arg0: i32, %arg1: i32) -> (i32, i32) {
    %c0_i32 = arith.constant 0 : i32
    %c0_i32_0 = arith.constant 0 : i32
    %c0_i32_1 = arith.constant 0 : i32
    return %c0_i32, %c0_i32_0 : i32, i32
  }
  func.func @transform_2(%arg0: i32, %arg1: i32) -> (i32, i32) {
    %c0_i32 = arith.constant 0 : i32
    %c0_i32_0 = arith.constant 0 : i32
    %c0_i32_1 = arith.constant 0 : i32
    return %c0_i32, %c0_i32_0 : i32, i32
  }
  func.func @transform_3(%arg0: i32, %arg1: i32) -> (i32, i32) {
    %c0_i32 = arith.constant 0 : i32
    %c0_i32_0 = arith.constant 0 : i32
    %c0_i32_1 = arith.constant 0 : i32
    return %c0_i32, %c0_i32_0 : i32, i32
  }
  func.func @transform_4(%arg0: i32, %arg1: i32) -> (i32, i32) {
    %c0_i32 = arith.constant 0 : i32
    %c0_i32_0 = arith.constant 0 : i32
    %c0_i32_1 = arith.constant 0 : i32
    return %c0_i32, %c0_i32_0 : i32, i32
  }
  func.func @transform_5(%arg0: i32, %arg1: i32) -> (i32, i32, i32) {
    %c0_i32 = arith.constant 0 : i32
    %c0_i32_0 = arith.constant 0 : i32
    return %arg0, %c0_i32, %arg1 : i32, i32, i32
  }
}

</mosaic_0001>

<bundles_post_ra>
// kernel: tpu_custom_call.1
= control target key start
LH: loop header
LB: loop body
LE: loop exit
PB: predicated region body
PF: predicated region fallthrough
CT: control target
= control target key end

     0   :  { %10 = vsyncpa [#allocation3], 0  ;;  %s835_s0 = inlined_call_operand.vmem [shape: f32[2,4,256], index: 0, kind: input, shape index: {}]   ;;  %s836_s1 = inlined_call_operand.vmem [shape: bf16[32,4], index: 1, kind: input, shape index: {}]   ;;  %s837_s2 = inlined_call_operand.vmem [shape: f32[32,1], index: 2, kind: input, shape index: {}]   ;;  %s838_s3 = inlined_call_operand.vmem [shape: bf16[4,32], index: 3, kind: input, shape index: {}]   ;;  %s839_s4 = inlined_call_operand.vmem [shape: f32[4,1], index: 4, kind: input, shape index: {}]   ;;  %s840_s5 = inlined_call_operand.hbm [shape: f32[2,4,256], index: 5, kind: output, shape index: {}]  }
   0x1   :  { %12 = vsyncpa [#allocation3 + $0x1], 0  ;;  %s714_s18 = smov 0   ;;  %s716_s19 = smov 0  }
   0x2   :  { %s718_s20 = smov 0   ;;  %s720_s21 = smov 0  }
   0x3   :  { %s722_s22 = smov 0   ;;  %s724_s23 = smov 0  }
   0x4 LB: > { %s513_s24 = sadd.s32 4294967295, %s681_s23   ;;  %s514_s25 = sadd.s32 4294967294, %s681_s23   ;;  %s681_s23 = sphi %s724_s23, %s18_s23   ;;  %s677_s22 = sphi %s722_s22, %s847_s22   ;;  %s673_s21 = sphi %s720_s21, %s846_s21   ;;  %s669_s20 = sphi %s718_s20, %s845_s20   ;;  %s665_s19 = sphi %s716_s19, %s844_s19   ;;  %s661_s18 = sphi %s714_s18, %s843_s18  }
   0x5   : > { %s30_s26 = sadd.s32 1, %s677_s22  ;;  %s151_s27 = sadd.s32 1, %s669_s20 }
   0x6   : > { %p32_p0 = scmp.ge.s32.totalorder %s30_s26, 2  ;;  %p161_p1 = scmp.ne.s32.totalorder %s669_s20, %s665_s19 }
   0x7   : > { %p162_p2 = scmp.eq.s32.totalorder %s513_s24, 1  ;;  %p167_p3 = scmp.ne.s32.totalorder %s665_s19, %s661_s18 }
   0x8   : > { %s849_s26 = smov (%p32_p0, %s30_s26), 0  ;;  %p168_p5 = scmp.eq.s32.totalorder %s514_s25, 1 }
   0x9   : > { %p754_p4 = por %p162_p2, %p161_p1  ;;  %s146_s29 = ssub.s32 %s677_s22, %s849_s26 }
   0xa   : > { %p517_p6 = scmp.ge.s32.totalorder %s681_s23, 1  ;;  %p149_p7 = scmp.eq.s32.totalorder %s146_s29, 0 }
   0xb   : > { %p761_p8 = por %p168_p5, %p167_p3  ;;  %p211_p9 = scmp.lt.s32.totalorder %s681_s23, 3 }
   0xc   : > { %s767_s6 = scalar_select %p149_p7, %s669_s20, %s151_s27  }
   0xd   : > { %p212_p10 = pnand %p517_p6, %p211_p9 }
   0xe   : > { %p244_p11 = scmp.lt.s32.totalorder (!%p212_p10), %s673_s21, 1  ;;  %s543_s15 = sshll.u32 (!%p212_p10), %s673_s21, 3 }
   0xf   : > { %215 = sbr.rel (%p212_p10) target bundleno = 344 (0x158), region = 40  ;;  %s432_s24 = scalar_lea.hbm (!%p212_p10), %s840_s5, %s543_s15 }
  0x10   : > { %s436_s29 = sshll.u32 (!%p212_p10), %s432_s24, 4  ;;  %s623_s11 = scalar_lea.hbm (!%p212_p10), %s840_s5, 16  ;;  %s437_s29 = int_to_ptr.hbm [resolvable:$true] %s436_s29 }
  0x11   : > { %s617_s7 = sshra.s32 (!%p212_p10), %s437_s29, 4  ;;  %s618_s7 = int_to_ptr.hbm [resolvable:$true] %s617_s7 }
  0x12   : > { %s619_s8 = scalar_lea.hbm (!%p212_p10), %s618_s7, 8  ;;  %p624_p1 = scmp.lt.s32.totalorder (!%p212_p10), %s618_s7, %s840_s5 }
  0x13   : > { %p620_p12 = scmp.ne.s32.totalorder (!%p212_p10), %s618_s7, %s619_s8  ;;  %p625_p2 = scmp.lt.s32.totalorder (!%p212_p10), %s623_s11, %s619_s8 }
  0x14   : > { %v260_v0 = vld [vmem:[%s837_s2] sm:$0xff]  ;;  %v683_v1 = vmov 0   ;;  %s245_s9 = scalar_select %p244_p11, %s673_s21, 1  ;;  %v262_v2 = vld [vmem:[%s837_s2 + $0x10] sm:$0xff]  ;;  %v261_v4 = vld [vmem:[%s837_s2 + $0x8] sm:$0xff]  ;;  %vm311_vm0 = vcmask 1041408  }
  0x15   : > { %601 = vset.pattern.permute.xlu1 %v683_v1  ;;  %600 = vset.pattern.permute.xlu0 %v683_v1  ;;  %v263_v5 = vld [vmem:[%s837_s2 + $0x18] sm:$0xff]  ;;  %v541_v12 = vld [vmem:[%s836_s1] sm:$0xff]  ;;  %vm304_vm1 = vcmask 31744   ;;  %v542_v13 = vld [vmem:[%s836_s1 + $0x8] sm:$0xff]  ;;  %vm381_vm2 = vcmask 261120   ;;  %vm414_vm3 = vcmask 1043456   ;;  %p621_p13 = pnand %p620_p12, %p754_p4  ;;  %p626_p3 = por %p625_p2, %p624_p1 }
  0x16   : > { %276 = vperm.xlu1 %601, %v260_v0   ;;  %602 = vset.pattern.permute.xlu2 %v683_v1  ;;  %s540_s10 = sshll.u32 %s245_s9, 3  ;;  %v265_v18 = vld [vmem:[%s839_s4] sm:$0xf] }
  0x17   : > { %s251_s13 = scalar_lea.vmem %s835_s0, %s540_s10  ;;  %286 = vperm.xlu0 %600, %v262_v2   ;;  %378 = vperm.xlu2 %602, %v265_v18   ;;  %v264_v55 = vld [vmem:[%s838_s3] sm:$0x3]  ;;  %p622_p0 = pneg %p621_p13 }
  0x18   : > { %v255_v3 = vld [vmem:[%s251_s13] sm:$0xff]  ;;  %s240_s13 = sand.u32 1, %s665_s19  }
  0x19   : > { %267 = vst [vmem:[#allocation1] ss:$2 sm:$0xff] %v255_v3  ;;  %s518_s14 = sshll.u32 %s240_s13, 3  ;;  %s419_s21 = scalar_lea.sflag [#allocation3], %s240_s13 }
  0x1a   : > { %s242_s25 = scalar_lea.vmem [#allocation2], %s518_s14  ;;  %p627_p5 = pnand %p626_p3, %p622_p0 }
  0x1b   : > { %s434_s27 = sshll.u32 %s242_s25, 4  ;;  %s435_s27 = int_to_ptr.vmem [resolvable:$true] %s434_s27 }
  0x1e   : > { %281 = vperm.xlu1 %601, %v261_v4  }
  0x1f   : > { %291 = vperm.xlu0 %600, %v263_v5  }
  0x20   : > { %v268_v6 = vld.sshfl [vmem:[#allocation1] sm:$0xff pattern:$0x75316420]  ;;  %v269_v7 = vld.sshfl [vmem:[#allocation1 + $0x8] sm:$0xff pattern:$0x75316420] }
  0x21   : > { %v272_v8 = vpack.c.bf16 %v268_v6, %v268_v6  ;;  %v273_v9 = vpack.c.bf16 %v269_v7, %v269_v7 }
  0x23   : > { %v313_v10 = vsel %vm311_vm0, %v272_v8, 0  ;;  %v316_v11 = vsel %vm311_vm0, %v273_v9, 0 }
  0x24   : > { %325 = vmatpush.bf16.msra.mxu0 %v313_v10  ;;  %344 = vmatpush.bf16.msra.mxu1 %v316_v11 }
  0x27   : > { %529 = vmatmul.msk.bf16.vlgmr.msra.gmra.mxu0 %vm304_vm1, %v541_v12  ;;  %531 = vmatmul.msk.bf16.vlgmr.msra.gmra.mxu1 %vm304_vm1, %v541_v12 }
  0x37   : > { %530 = vmatmul.msk.bf16.gmra.mxu0 %vm304_vm1, %v542_v13  ;;  %532 = vmatmul.msk.bf16.gmra.mxu1 %vm304_vm1, %v542_v13 }
  0x71   : > { %v379_v56 = vpop.permute.xlu2 %378 }
  0x88   : > { %v277_v19 = vpop.permute.xlu1 %276 }
  0x89   : > { %v287_v20 = vpop.permute.xlu0 %286 }
  0x90   : > { %v282_v23 = vpop.permute.xlu1 %281 }
  0x91   : > { %v292_v28 = vpop.permute.xlu0 %291 }
  0xa4   : > { %v327_v14 = vpop.f32.mrf.mxu0  ;;  %v346_v15 = vpop.f32.mrf.mxu1 }
  0xa5   : > { %v328_v29 = vadd.f32 %v327_v14, %v277_v19  ;;  %v347_v30 = vadd.f32 %v346_v15, %v277_v19 }
  0xa7   : > { %v356_v41 = vmax.f32 %v328_v29, 0.0  ;;  %v357_v42 = vmax.f32 %v347_v30, 0.0 }
  0xa9   : > { %v364_v51 = vmin.f32 %v356_v41, 6.0  ;;  %v365_v52 = vmin.f32 %v357_v42, 6.0 }
  0xac   : > { %v329_v16 = vpop.f32.mrf.mxu0  ;;  %v348_v17 = vpop.f32.mrf.mxu1 }
  0xad   : > { %v330_v26 = vadd.f32 %v329_v16, %v282_v23  ;;  %v349_v27 = vadd.f32 %v348_v17, %v282_v23 }
  0xaf   : > { %v358_v37 = vmax.f32 %v330_v26, 0.0  ;;  %v359_v38 = vmax.f32 %v349_v27, 0.0 }
  0xb1   : > { %v366_v47 = vmin.f32 %v358_v37, 6.0  ;;  %v367_v48 = vmin.f32 %v359_v38, 6.0 }
  0xb3   : > { %v372_v53 = vpack.c.bf16 %v366_v47, %v364_v51  ;;  %v373_v54 = vpack.c.bf16 %v367_v48, %v365_v52 }
  0xb4   : > { %v332_v21 = vpop.f32.mrf.mxu0  ;;  %v351_v22 = vpop.f32.mrf.mxu1 }
  0xb5   : > { %v333_v24 = vadd.f32 %v332_v21, %v287_v20  ;;  %v352_v25 = vadd.f32 %v351_v22, %v287_v20 }
  0xb7   : > { %v360_v33 = vmax.f32 %v333_v24, 0.0  ;;  %v361_v34 = vmax.f32 %v352_v25, 0.0 }
  0xb9   : > { %v368_v43 = vmin.f32 %v360_v33, 6.0  ;;  %v369_v44 = vmin.f32 %v361_v34, 6.0 }
  0xbc   : > { %v334_v31 = vpop.f32.mrf.mxu0  ;;  %v353_v32 = vpop.f32.mrf.mxu1 }
  0xbd   : > { %v335_v35 = vadd.f32 %v334_v31, %v292_v28  ;;  %v354_v36 = vadd.f32 %v353_v32, %v292_v28 }
  0xbf   : > { %v362_v39 = vmax.f32 %v335_v35, 0.0  ;;  %v363_v40 = vmax.f32 %v354_v36, 0.0 }
  0xc1   : > { %v370_v45 = vmin.f32 %v362_v39, 6.0  ;;  %v371_v46 = vmin.f32 %v363_v40, 6.0 }
  0xc3   : > { %v374_v49 = vpack.c.bf16 %v370_v45, %v368_v43  ;;  %v375_v50 = vpack.c.bf16 %v371_v46, %v369_v44 }
  0xc5   : > { %391 = vmatpush.bf16.msra.mxu2 %v374_v49  ;;  %404 = vmatpush.bf16.msra.mxu3 %v375_v50 }
  0xc9   : > { %392 = vmatpush.bf16.msra.mxu2 %v372_v53  ;;  %405 = vmatpush.bf16.msra.mxu3 %v373_v54 }
  0xcc   : > { %533 = vmatmul.msk.bf16.vlgmr.msra.gmra.mxu2 %vm381_vm2, %v264_v55  ;;  %534 = vmatmul.msk.bf16.vlgmr.msra.gmra.mxu3 %vm381_vm2, %v264_v55 }
 0x14f   : > { %v394_v57 = vpop.f32.mrf.mxu2  ;;  %v407_v58 = vpop.f32.mrf.mxu3 }
 0x150   : > { %v408_v59 = vadd.f32 %v407_v58, %v379_v56  ;;  %v395_v60 = vadd.f32 %v394_v57, %v379_v56 }
 0x152   : > { %v413_v61 = vrot.slane %v408_v59, 4 }
 0x154   : > { %v415_v62 = vsel %vm414_vm3, %v395_v60, %v413_v61 }
 0x155   : > { %417 = vst [vmem:[%s242_s25] sm:$0xff] %v415_v62 }
 0x156   : > { %630 = shalt.err (!%p627_p5)
}
 0x157   : > { %544 = dma.vmem_to_hbm [thread:$0]  (%p754_p4), %s435_s27, 128, %s437_s29, %s419_s21   ;;  %v396_v63 = vpop.f32.mrf.mxu2  ;;  %v409_v0 = vpop.f32.mrf.mxu3 }
 0x158 PF: > { %p550_p6 = scmp.ge.s32.totalorder %s681_s23, 2  ;;  %s448_s13 = sand.u32 1, %s661_s18  }
 0x159   : > { %s449_s15 = scalar_lea.sflag [#allocation3], %s448_s13 }
 0x15a   : > { %p547_p7 = pnand %p550_p6, %p761_p8 }
 0x15c   : > { %p548_p9 = pneg %p547_p7 }
 0x15e   : > { %656 = dma.done.wait (%p548_p9), %s449_s15, 128  }
 0x15f   : > { %658 = vsyncadd (%p548_p9), %s449_s15, 4294967168  ;;  %s18_s23 = sadd.s32 1, %s681_s23   ;;  %s843_s18 = smov %s665_s19 }
 0x160   : > { %p15_p10 = scmp.ge.s32.totalorder %s18_s23, 4   ;;  %s844_s19 = smov %s669_s20 }
 0x161   : > { %s845_s20 = smov %s767_s6  ;;  %s846_s21 = smov %s677_s22 }
 0x162   : > { %s847_s22 = smov %s849_s26  ;;  %17 = sbr.rel (!%p15_p10) target bundleno = 4 (0x4), region = 75 }
 0x167   :  { %455 = vsyncpa [#allocation3], 1 }
 0x168   :  { %457 = vsyncpa [#allocation3 + $0x1], 1 }

</bundles_post_ra>
